<compile_context>
chip_gen: v7x
topology: tpu7x:2x2x1
jax: 0.10.0
libtpu: 0.0.40
codegen_flags: <defaults>
</compile_context>

<pallas_src>
import jax
import jax.numpy as jnp
from jax.experimental import pallas as pl
from jax.experimental.pallas import tpu as pltpu


def mlp_kernel(x_ref, w1_ref, b1_ref, w2_ref, b2_ref, o_ref):
    # x_ref: (5, TB) f32 in VMEM (batch on the lane axis).
    # w1_ref: (3, 5), b1_ref: (3, 1), w2_ref: (1, 3), b2_ref: (1, 1) in SMEM.
    x = x_ref[...]                      # (5, TB)
    tb = x.shape[1]

    # Fused fc1 -> ReLU -> fc2, unrolled over the tiny feature dims.
    # y[0,:] = b2 + sum_j w2[0,j] * relu(b1[j] + sum_k w1[j,k] * x[k,:])
    y = jnp.full((1, tb), b2_ref[0, 0], jnp.float32)
    for j in range(3):                  # fc1 output features
        h = jnp.full((1, tb), b1_ref[j, 0], jnp.float32)
        for k in range(5):              # fc1 input features
            h = h + w1_ref[j, k] * x[k:k + 1, :]
        h = jnp.maximum(h, 0.0)         # ReLU (VPU)
        y = y + w2_ref[0, j] * h        # fc2 accumulate (VPU)

    o_ref[...] = jax.nn.sigmoid(y).astype(o_ref.dtype)   # EUP exp/recip


def net_forward(x, w1, b1, w2, b2, *, tb=512):
    """x: (B, 5). Weights in PyTorch layout: w1 (3,5), b1 (3,), w2 (1,3), b2 (1,)."""
    B = x.shape[0]
    n_tiles = pl.cdiv(B, tb)
    Bp = n_tiles * tb

    # Batch onto the lane axis; zero-pad the ragged tail (discarded after).
    xT = jnp.pad(x.T.astype(jnp.float32), ((0, 0), (0, Bp - B)))   # (5, Bp)
    b1c = b1.reshape(3, 1).astype(jnp.float32)
    b2c = b2.reshape(1, 1).astype(jnp.float32)

    outT = pl.pallas_call(
        mlp_kernel,
        out_shape=jax.ShapeDtypeStruct((1, Bp), jnp.float32),
        grid=(n_tiles,),
        in_specs=[
            # Lane-dense activation tile, streamed per grid step.
            pl.BlockSpec((5, tb), lambda i: (0, i)),
            # Tiny scalar tables resident in SMEM (DMA'd once, scalar reads).
            pl.BlockSpec(memory_space=pltpu.MemorySpace.SMEM),
            pl.BlockSpec(memory_space=pltpu.MemorySpace.SMEM),
            pl.BlockSpec(memory_space=pltpu.MemorySpace.SMEM),
            pl.BlockSpec(memory_space=pltpu.MemorySpace.SMEM),
        ],
        out_specs=pl.BlockSpec((1, tb), lambda i: (0, i)),
        compiler_params=pltpu.CompilerParams(
            dimension_semantics=("parallel",),      # shards across TCs on v7x
        ),
    )(xT, w1.astype(jnp.float32), b1c, w2.astype(jnp.float32), b2c)

    # Back to PyTorch's (B, 1) layout; drop padded lanes.
    return outT[0, :B].reshape(B, 1)


def init_params(key):
    """Deterministic init mimicking nn.Linear's U(-1/sqrt(fan_in), +1/sqrt(fan_in)),
    stored in PyTorch layout: W is (out_features, in_features)."""
    k1, k2, k3, k4 = jax.random.split(key, 4)
    bound1 = 1.0 / jnp.sqrt(5.0)
    bound2 = 1.0 / jnp.sqrt(3.0)
    w1 = jax.random.uniform(k1, (3, 5), jnp.float32, -bound1, bound1)
    b1 = jax.random.uniform(k2, (3,), jnp.float32, -bound1, bound1)
    w2 = jax.random.uniform(k3, (1, 3), jnp.float32, -bound2, bound2)
    b2 = jax.random.uniform(k4, (1,), jnp.float32, -bound2, bound2)
    return w1, b1, w2, b2


if __name__ == "__main__":
    key = jax.random.PRNGKey(0)
    k_x, k_p = jax.random.split(key)

    # NOTE: at batch sizes this small, plain XLA fusion would be faster than a
    # Pallas launch; the kernel is laid out for large batched inference.
    B = 8
    x = jax.random.normal(k_x, (B, 5), jnp.float32)
    w1, b1, w2, b2 = init_params(k_p)

    out = net_forward(x, w1, b1, w2, b2)
    jax.block_until_ready(out)

    # Pure-JAX reference (PyTorch semantics: x @ W1^T + b1 -> ReLU -> x @ W2^T + b2 -> sigmoid)
    ref = jax.nn.sigmoid(jnp.maximum(x @ w1.T + b1, 0.0) @ w2.T + b2)
    assert out.shape == (B, 1)
    assert jnp.allclose(out, ref, atol=1e-5), "mismatch vs reference"

    print("KERNEL_OK")
</pallas_src>

<mosaic_0001>
module attributes {stable_mosaic.version = 11 : i64} {
  func.func @mlp_kernel(%arg0: i32, %arg1: memref<5x512xf32, #tpu.memory_space<vmem>>, %arg2: memref<3x5xf32, #tpu.memory_space<smem>>, %arg3: memref<3x1xf32, #tpu.memory_space<smem>>, %arg4: memref<1x3xf32, #tpu.memory_space<smem>>, %arg5: memref<1x1xf32, #tpu.memory_space<smem>>, %arg6: memref<1x512xf32, #tpu.memory_space<vmem>>) attributes {dimension_semantics = [#tpu.dimension_semantics<parallel>], iteration_bounds = array<i64: 1>, scalar_prefetch = 0 : i64, scratch_operands = 0 : i64, tpu.core_type = #tpu.core_type<tc>, window_params = [{transform_indices = @transform_0, window_bounds = array<i64: 5, 512>}, {transform_indices = @transform_1, window_bounds = array<i64: 3, 5>}, {transform_indices = @transform_2, window_bounds = array<i64: 3, 1>}, {transform_indices = @transform_3, window_bounds = array<i64: 1, 3>}, {transform_indices = @transform_4, window_bounds = array<i64: 1, 1>}, {transform_indices = @transform_5, window_bounds = array<i64: 1, 512>}]} {
    %c0 = arith.constant 0 : index
    %c0_0 = arith.constant 0 : index
    %0 = vector.load %arg1[%c0, %c0_0] : memref<5x512xf32, #tpu.memory_space<vmem>>, vector<5x512xf32>
    %c0_1 = arith.constant 0 : index
    %c0_2 = arith.constant 0 : index
    %1 = memref.load %arg5[%c0_1, %c0_2] : memref<1x1xf32, #tpu.memory_space<smem>>
    %2 = vector.broadcast %1 : f32 to vector<1x512xf32>
    %c0_3 = arith.constant 0 : index
    %c0_4 = arith.constant 0 : index
    %3 = memref.load %arg3[%c0_3, %c0_4] : memref<3x1xf32, #tpu.memory_space<smem>>
    %4 = vector.broadcast %3 : f32 to vector<1x512xf32>
    %c0_5 = arith.constant 0 : index
    %c0_6 = arith.constant 0 : index
    %5 = memref.load %arg2[%c0_5, %c0_6] : memref<3x5xf32, #tpu.memory_space<smem>>
    %6 = vector.extract_strided_slice %0 {offsets = [0, 0], sizes = [1, 512], strides = [1, 1]} : vector<5x512xf32> to vector<1x512xf32>
    %7 = vector.broadcast %5 : f32 to vector<1x512xf32>
    %8 = arith.mulf %7, %6 : vector<1x512xf32>
    %9 = arith.addf %4, %8 : vector<1x512xf32>
    %c0_7 = arith.constant 0 : index
    %c1 = arith.constant 1 : index
    %10 = memref.load %arg2[%c0_7, %c1] : memref<3x5xf32, #tpu.memory_space<smem>>
    %11 = vector.extract_strided_slice %0 {offsets = [1, 0], sizes = [1, 512], strides = [1, 1]} : vector<5x512xf32> to vector<1x512xf32>
    %12 = vector.broadcast %10 : f32 to vector<1x512xf32>
    %13 = arith.mulf %12, %11 : vector<1x512xf32>
    %14 = arith.addf %9, %13 : vector<1x512xf32>
    %c0_8 = arith.constant 0 : index
    %c2 = arith.constant 2 : index
    %15 = memref.load %arg2[%c0_8, %c2] : memref<3x5xf32, #tpu.memory_space<smem>>
    %16 = vector.extract_strided_slice %0 {offsets = [2, 0], sizes = [1, 512], strides = [1, 1]} : vector<5x512xf32> to vector<1x512xf32>
    %17 = vector.broadcast %15 : f32 to vector<1x512xf32>
    %18 = arith.mulf %17, %16 : vector<1x512xf32>
    %19 = arith.addf %14, %18 : vector<1x512xf32>
    %c0_9 = arith.constant 0 : index
    %c3 = arith.constant 3 : index
    %20 = memref.load %arg2[%c0_9, %c3] : memref<3x5xf32, #tpu.memory_space<smem>>
    %21 = vector.extract_strided_slice %0 {offsets = [3, 0], sizes = [1, 512], strides = [1, 1]} : vector<5x512xf32> to vector<1x512xf32>
    %22 = vector.broadcast %20 : f32 to vector<1x512xf32>
    %23 = arith.mulf %22, %21 : vector<1x512xf32>
    %24 = arith.addf %19, %23 : vector<1x512xf32>
    %c0_10 = arith.constant 0 : index
    %c4 = arith.constant 4 : index
    %25 = memref.load %arg2[%c0_10, %c4] : memref<3x5xf32, #tpu.memory_space<smem>>
    %26 = vector.extract_strided_slice %0 {offsets = [4, 0], sizes = [1, 512], strides = [1, 1]} : vector<5x512xf32> to vector<1x512xf32>
    %27 = vector.broadcast %25 : f32 to vector<1x512xf32>
    %28 = arith.mulf %27, %26 : vector<1x512xf32>
    %29 = arith.addf %24, %28 : vector<1x512xf32>
    %cst = arith.constant 0.000000e+00 : f32
    %30 = vector.broadcast %cst : f32 to vector<1x512xf32>
    %31 = arith.maximumf %29, %30 : vector<1x512xf32>
    %c0_11 = arith.constant 0 : index
    %c0_12 = arith.constant 0 : index
    %32 = memref.load %arg4[%c0_11, %c0_12] : memref<1x3xf32, #tpu.memory_space<smem>>
    %33 = vector.broadcast %32 : f32 to vector<1x512xf32>
    %34 = arith.mulf %33, %31 : vector<1x512xf32>
    %35 = arith.addf %2, %34 : vector<1x512xf32>
    %c1_13 = arith.constant 1 : index
    %c0_14 = arith.constant 0 : index
    %36 = memref.load %arg3[%c1_13, %c0_14] : memref<3x1xf32, #tpu.memory_space<smem>>
    %37 = vector.broadcast %36 : f32 to vector<1x512xf32>
    %c1_15 = arith.constant 1 : index
    %c0_16 = arith.constant 0 : index
    %38 = memref.load %arg2[%c1_15, %c0_16] : memref<3x5xf32, #tpu.memory_space<smem>>
    %39 = vector.extract_strided_slice %0 {offsets = [0, 0], sizes = [1, 512], strides = [1, 1]} : vector<5x512xf32> to vector<1x512xf32>
    %40 = vector.broadcast %38 : f32 to vector<1x512xf32>
    %41 = arith.mulf %40, %39 : vector<1x512xf32>
    %42 = arith.addf %37, %41 : vector<1x512xf32>
    %c1_17 = arith.constant 1 : index
    %c1_18 = arith.constant 1 : index
    %43 = memref.load %arg2[%c1_17, %c1_18] : memref<3x5xf32, #tpu.memory_space<smem>>
    %44 = vector.extract_strided_slice %0 {offsets = [1, 0], sizes = [1, 512], strides = [1, 1]} : vector<5x512xf32> to vector<1x512xf32>
    %45 = vector.broadcast %43 : f32 to vector<1x512xf32>
    %46 = arith.mulf %45, %44 : vector<1x512xf32>
    %47 = arith.addf %42, %46 : vector<1x512xf32>
    %c1_19 = arith.constant 1 : index
    %c2_20 = arith.constant 2 : index
    %48 = memref.load %arg2[%c1_19, %c2_20] : memref<3x5xf32, #tpu.memory_space<smem>>
    %49 = vector.extract_strided_slice %0 {offsets = [2, 0], sizes = [1, 512], strides = [1, 1]} : vector<5x512xf32> to vector<1x512xf32>
    %50 = vector.broadcast %48 : f32 to vector<1x512xf32>
    %51 = arith.mulf %50, %49 : vector<1x512xf32>
    %52 = arith.addf %47, %51 : vector<1x512xf32>
    %c1_21 = arith.constant 1 : index
    %c3_22 = arith.constant 3 : index
    %53 = memref.load %arg2[%c1_21, %c3_22] : memref<3x5xf32, #tpu.memory_space<smem>>
    %54 = vector.extract_strided_slice %0 {offsets = [3, 0], sizes = [1, 512], strides = [1, 1]} : vector<5x512xf32> to vector<1x512xf32>
    %55 = vector.broadcast %53 : f32 to vector<1x512xf32>
    %56 = arith.mulf %55, %54 : vector<1x512xf32>
    %57 = arith.addf %52, %56 : vector<1x512xf32>
    %c1_23 = arith.constant 1 : index
    %c4_24 = arith.constant 4 : index
    %58 = memref.load %arg2[%c1_23, %c4_24] : memref<3x5xf32, #tpu.memory_space<smem>>
    %59 = vector.extract_strided_slice %0 {offsets = [4, 0], sizes = [1, 512], strides = [1, 1]} : vector<5x512xf32> to vector<1x512xf32>
    %60 = vector.broadcast %58 : f32 to vector<1x512xf32>
    %61 = arith.mulf %60, %59 : vector<1x512xf32>
    %62 = arith.addf %57, %61 : vector<1x512xf32>
    %cst_25 = arith.constant 0.000000e+00 : f32
    %63 = vector.broadcast %cst_25 : f32 to vector<1x512xf32>
    %64 = arith.maximumf %62, %63 : vector<1x512xf32>
    %c0_26 = arith.constant 0 : index
    %c1_27 = arith.constant 1 : index
    %65 = memref.load %arg4[%c0_26, %c1_27] : memref<1x3xf32, #tpu.memory_space<smem>>
    %66 = vector.broadcast %65 : f32 to vector<1x512xf32>
    %67 = arith.mulf %66, %64 : vector<1x512xf32>
    %68 = arith.addf %35, %67 : vector<1x512xf32>
    %c2_28 = arith.constant 2 : index
    %c0_29 = arith.constant 0 : index
    %69 = memref.load %arg3[%c2_28, %c0_29] : memref<3x1xf32, #tpu.memory_space<smem>>
    %70 = vector.broadcast %69 : f32 to vector<1x512xf32>
    %c2_30 = arith.constant 2 : index
    %c0_31 = arith.constant 0 : index
    %71 = memref.load %arg2[%c2_30, %c0_31] : memref<3x5xf32, #tpu.memory_space<smem>>
    %72 = vector.extract_strided_slice %0 {offsets = [0, 0], sizes = [1, 512], strides = [1, 1]} : vector<5x512xf32> to vector<1x512xf32>
    %73 = vector.broadcast %71 : f32 to vector<1x512xf32>
    %74 = arith.mulf %73, %72 : vector<1x512xf32>
    %75 = arith.addf %70, %74 : vector<1x512xf32>
    %c2_32 = arith.constant 2 : index
    %c1_33 = arith.constant 1 : index
    %76 = memref.load %arg2[%c2_32, %c1_33] : memref<3x5xf32, #tpu.memory_space<smem>>
    %77 = vector.extract_strided_slice %0 {offsets = [1, 0], sizes = [1, 512], strides = [1, 1]} : vector<5x512xf32> to vector<1x512xf32>
    %78 = vector.broadcast %76 : f32 to vector<1x512xf32>
    %79 = arith.mulf %78, %77 : vector<1x512xf32>
    %80 = arith.addf %75, %79 : vector<1x512xf32>
    %c2_34 = arith.constant 2 : index
    %c2_35 = arith.constant 2 : index
    %81 = memref.load %arg2[%c2_34, %c2_35] : memref<3x5xf32, #tpu.memory_space<smem>>
    %82 = vector.extract_strided_slice %0 {offsets = [2, 0], sizes = [1, 512], strides = [1, 1]} : vector<5x512xf32> to vector<1x512xf32>
    %83 = vector.broadcast %81 : f32 to vector<1x512xf32>
    %84 = arith.mulf %83, %82 : vector<1x512xf32>
    %85 = arith.addf %80, %84 : vector<1x512xf32>
    %c2_36 = arith.constant 2 : index
    %c3_37 = arith.constant 3 : index
    %86 = memref.load %arg2[%c2_36, %c3_37] : memref<3x5xf32, #tpu.memory_space<smem>>
    %87 = vector.extract_strided_slice %0 {offsets = [3, 0], sizes = [1, 512], strides = [1, 1]} : vector<5x512xf32> to vector<1x512xf32>
    %88 = vector.broadcast %86 : f32 to vector<1x512xf32>
    %89 = arith.mulf %88, %87 : vector<1x512xf32>
    %90 = arith.addf %85, %89 : vector<1x512xf32>
    %c2_38 = arith.constant 2 : index
    %c4_39 = arith.constant 4 : index
    %91 = memref.load %arg2[%c2_38, %c4_39] : memref<3x5xf32, #tpu.memory_space<smem>>
    %92 = vector.extract_strided_slice %0 {offsets = [4, 0], sizes = [1, 512], strides = [1, 1]} : vector<5x512xf32> to vector<1x512xf32>
    %93 = vector.broadcast %91 : f32 to vector<1x512xf32>
    %94 = arith.mulf %93, %92 : vector<1x512xf32>
    %95 = arith.addf %90, %94 : vector<1x512xf32>
    %cst_40 = arith.constant 0.000000e+00 : f32
    %96 = vector.broadcast %cst_40 : f32 to vector<1x512xf32>
    %97 = arith.maximumf %95, %96 : vector<1x512xf32>
    %c0_41 = arith.constant 0 : index
    %c2_42 = arith.constant 2 : index
    %98 = memref.load %arg4[%c0_41, %c2_42] : memref<1x3xf32, #tpu.memory_space<smem>>
    %99 = vector.broadcast %98 : f32 to vector<1x512xf32>
    %100 = arith.mulf %99, %97 : vector<1x512xf32>
    %101 = arith.addf %68, %100 : vector<1x512xf32>
    %102 = arith.negf %101 : vector<1x512xf32>
    %103 = math.exp %102 : vector<1x512xf32>
    %cst_43 = arith.constant 1.000000e+00 : f32
    %104 = vector.broadcast %cst_43 : f32 to vector<1x512xf32>
    %105 = arith.addf %104, %103 : vector<1x512xf32>
    %106 = arith.divf %104, %105 : vector<1x512xf32>
    %c0_44 = arith.constant 0 : index
    %c0_45 = arith.constant 0 : index
    %107 = vector.load %arg6[%c0_44, %c0_45] : memref<1x512xf32, #tpu.memory_space<vmem>>, vector<1x512xf32>
    tpu.vector_store %arg6[%c0_44, %c0_45], %106 {strides = array<i32>} : memref<1x512xf32, #tpu.memory_space<vmem>>, vector<1x512xf32>,
    return
  }
  func.func @transform_0(%arg0: i32) -> (i32, i32) {
    %c0_i32 = arith.constant 0 : i32
    %c0_i32_0 = arith.constant 0 : i32
    return %c0_i32, %arg0 : i32, i32
  }
  func.func @transform_1(%arg0: i32) -> (i32, i32) {
    %c0_i32 = arith.constant 0 : i32
    %c0_i32_0 = arith.constant 0 : i32
    %c0_i32_1 = arith.constant 0 : i32
    return %c0_i32, %c0_i32_0 : i32, i32
  }
  func.func @transform_2(%arg0: i32) -> (i32, i32) {
    %c0_i32 = arith.constant 0 : i32
    %c0_i32_0 = arith.constant 0 : i32
    %c0_i32_1 = arith.constant 0 : i32
    return %c0_i32, %c0_i32_0 : i32, i32
  }
  func.func @transform_3(%arg0: i32) -> (i32, i32) {
    %c0_i32 = arith.constant 0 : i32
    %c0_i32_0 = arith.constant 0 : i32
    %c0_i32_1 = arith.constant 0 : i32
    return %c0_i32, %c0_i32_0 : i32, i32
  }
  func.func @transform_4(%arg0: i32) -> (i32, i32) {
    %c0_i32 = arith.constant 0 : i32
    %c0_i32_0 = arith.constant 0 : i32
    %c0_i32_1 = arith.constant 0 : i32
    return %c0_i32, %c0_i32_0 : i32, i32
  }
  func.func @transform_5(%arg0: i32) -> (i32, i32) {
    %c0_i32 = arith.constant 0 : i32
    %c0_i32_0 = arith.constant 0 : i32
    return %c0_i32, %arg0 : i32, i32
  }
}

</mosaic_0001>

<bundles_post_ra>
// kernel: tpu_custom_call.1
= control target key start
LH: loop header
LB: loop body
LE: loop exit
PB: predicated region body
PF: predicated region fallthrough
CT: control target
= control target key end

     0   :  { %11 = vsyncpa [#allocation4], 0  ;;  %s825_s0 = inlined_call_operand.hbm [shape: f32[5,512], index: 0, kind: input, shape index: {}]   ;;  %s826_s1 = inlined_call_operand.vmem [shape: f32[3,5], index: 1, kind: input, shape index: {}]   ;;  %s827_s2 = inlined_call_operand.vmem [shape: f32[3,1], index: 2, kind: input, shape index: {}]   ;;  %s828_s3 = inlined_call_operand.vmem [shape: f32[1,3], index: 3, kind: input, shape index: {}]   ;;  %s829_s4 = inlined_call_operand.<no memory space> [shape: f32[1,1], index: 4, kind: input, shape index: {}]   ;;  %s830_s5 = inlined_call_operand.hbm [shape: f32[1,512], index: 5, kind: output, shape index: {}]  }
   0x1   :  { %12 = vsyncpa [#allocation6], 0 }
   0x2   :  { %13 = vsyncpa [#allocation9], 0  ;;  %s41_s20 = sshll.u32 %s827_s2, 4  ;;  %s42_s20 = int_to_ptr.vmem [resolvable:$true] %s41_s20 }
   0x3   :  { %14 = vsyncpa [#allocation5], 0  ;;  %s537_s21 = scalar_lea.vmem %s42_s20, 64  ;;  %p542_p1 = scmp.lt.s32.totalorder %s42_s20, %s42_s20 }
   0x4   :  { %p538_p0 = scmp.ne.s32.totalorder %s42_s20, %s537_s21  ;;  %p543_p2 = scmp.lt.s32.totalorder %s537_s21, %s537_s21 }
   0x6   :  { %p544_p3 = por %p543_p2, %p542_p1 }
   0x8   :  { %p545_p4 = pnand %p544_p3, %p538_p0 }
   0xa   :  { %548 = shalt.err (!%p545_p4)
}
   0xb   :  { %s625_s22 = smov [#allocation8]   ;;  %s626_s23 = smov [#allocation3]  }
   0xc   :  { %44 = dma.vmem_to_smem %s42_s20, 64, %s625_s22, [#allocation9]  }
   0xd   :  { %s21_s24 = sshll.u32 %s626_s23, 4  ;;  %s31_s27 = sshll.u32 %s826_s1, 4  ;;  %s22_s24 = int_to_ptr.vmem [resolvable:$true] %s21_s24  ;;  %s32_s27 = int_to_ptr.vmem [resolvable:$true] %s31_s27 }
   0xe   :  { %s549_s29 = scalar_lea.hbm %s825_s0, 512 }
   0xf   :  { %p550_p5 = scmp.ne.s32.totalorder %s825_s0, %s549_s29  ;;  %p553_p6 = scmp.lt.u32.totalorder %s549_s29, %s825_s0 }
  0x11   :  { %p555_p7 = pnand %p553_p6, %p550_p5 }
  0x13   :  { %558 = shalt.err (!%p555_p7)
}
  0x14   :  { %s559_s9 = scalar_lea.vmem %s22_s24, 512  ;;  %p564_p9 = scmp.lt.s32.totalorder %s22_s24, %s22_s24 }
  0x15   :  { %p560_p8 = scmp.ne.s32.totalorder %s22_s24, %s559_s9  ;;  %p565_p10 = scmp.lt.s32.totalorder %s559_s9, %s559_s9 }
  0x17   :  { %p566_p11 = por %p565_p10, %p564_p9 }
  0x19   :  { %p567_p12 = pnand %p566_p11, %p560_p8 }
  0x1b   :  { %570 = shalt.err (!%p567_p12)
}
  0x1c   :  { %24 = dma.hbm_to_vmem [thread:$0]  %s825_s0, 512, %s22_s24, [#allocation4]  }
  0x1d   :  { %s51_s13 = sshll.u32 %s828_s3, 4  ;;  %s571_s14 = scalar_lea.vmem %s32_s27, 64  ;;  %s52_s13 = int_to_ptr.vmem [resolvable:$true] %s51_s13 }
  0x1e   :  { %p572_p13 = scmp.ne.s32.totalorder %s32_s27, %s571_s14  ;;  %p576_p0 = scmp.lt.s32.totalorder %s32_s27, %s32_s27 }
  0x1f   :  { %p577_p1 = scmp.lt.s32.totalorder %s571_s14, %s571_s14 }
  0x21   :  { %p578_p2 = por %p577_p1, %p576_p0 }
  0x23   :  { %p579_p3 = pnand %p578_p2, %p572_p13 }
  0x25   :  { %582 = shalt.err (!%p579_p3)
}
  0x26   :  { %s627_s15 = smov [#allocation7]   ;;  %s583_s16 = scalar_lea.vmem %s52_s13, 16 }
  0x27   :  { %34 = dma.vmem_to_smem %s32_s27, 64, %s627_s15, [#allocation6]  }
  0x28   :  { %p584_p4 = scmp.ne.s32.totalorder %s52_s13, %s583_s16  ;;  %p588_p5 = scmp.lt.s32.totalorder %s52_s13, %s52_s13 }
  0x29   :  { %p589_p6 = scmp.lt.s32.totalorder %s583_s16, %s583_s16 }
  0x2b   :  { %p590_p7 = por %p589_p6, %p588_p5 }
  0x2d   :  { %p591_p8 = pnand %p590_p7, %p584_p4 }
  0x2f   :  { %594 = shalt.err (!%p591_p8)
}
  0x30   :  { %s628_s0 = smov [#allocation10]  }
  0x31   :  { %54 = dma.vmem_to_smem %s52_s13, 16, %s628_s0, [#allocation9]  }
  0x32   :  { %617 = dma.done.wait [#allocation4], 512  }
  0x33   :  { %618 = vsyncadd [#allocation4], 4294966784 }
  0x34   :  { %619 = dma.done.wait [#allocation6], 64  }
  0x35   :  { %620 = vsyncadd [#allocation6], 4294967232 }
  0x36   :  { %621 = dma.done.wait [#allocation9], 80  }
  0x37   :  { %622 = vsyncadd [#allocation9], 4294967216 }
  0x38   :  { %69 = sfence }
  0x39   :  { %s76_s3 = sld [smem:[#allocation8]]  ;;  %s493_s18 = sld [smem:[#allocation7 + $0x1]]  ;;  %v682_v0 = vld [vmem:[#allocation3] sm:$0x1f]  ;;  %v684_v1 = vld [vmem:[#allocation3 + $0x8] sm:$0x1f] }
  0x3a   :  { %s78_s17 = sld [smem:[#allocation7]]  ;;  %s494_s19 = sld [smem:[#allocation7 + $0x2]]  ;;  %v686_v2 = vld [vmem:[#allocation3 + $0x10] sm:$0x1f]  ;;  %v688_v3 = vld [vmem:[#allocation3 + $0x18] sm:$0x1f] }
  0x3b   :  { %s495_s20 = sld [smem:[#allocation7 + $0x3]]  ;;  %s496_s21 = sld [smem:[#allocation7 + $0x4]] }
  0x3c   :  { %s702_s22 = sld [smem:[#allocation7 + $0x80]]  ;;  %s710_s24 = sld [smem:[#allocation7 + $0x81]] }
  0x3d   :  { %s704_s23 = sld [smem:[#allocation8 + $0x80]]  ;;  %s717_s26 = sld [smem:[#allocation7 + $0x82]] }
  0x3e   :  { %s180_s25 = sld [smem:[#allocation10]]  ;;  %s720_s27 = sld [smem:[#allocation7 + $0x83]] }
  0x3f   :  { %v77_v4 = vstv %s76_s3  ;;  %v89_v10 = vstv %s493_s18  ;;  %s722_s2 = sld [smem:[#allocation7 + $0x84]]  ;;  %s754_s30 = sld [smem:[#allocation8 + $0x100]] }
  0x40   :  { %v79_v5 = vstv %s78_s17  ;;  %v111_v11 = vstv %s494_s19  ;;  %v90_v18 = vmul.f32 %v89_v10, %v682_v0  ;;  %v91_v19 = vmul.f32 %v89_v10, %v684_v1  ;;  %s756_s6 = sld [smem:[#allocation7 + $0x101]]  ;;  %s760_s8 = sld [smem:[#allocation7 + $0x102]] }
  0x41   :  { %v80_v6 = vmul.f32 %v79_v5, %v682_v0  ;;  %v81_v7 = vmul.f32 %v79_v5, %v684_v1  ;;  %v82_v8 = vmul.f32 %v79_v5, %v686_v2  ;;  %v83_v9 = vmul.f32 %v79_v5, %v688_v3  ;;  %s758_s7 = sld [smem:[#allocation10 + $0x1]]  ;;  %s787_s9 = sld [smem:[#allocation7 + $0x103]] }
  0x42   :  { %v133_v12 = vstv %s495_s20  ;;  %v155_v13 = vstv %s496_s21  ;;  %v92_v20 = vmul.f32 %v89_v10, %v686_v2  ;;  %v93_v21 = vmul.f32 %v89_v10, %v688_v3  ;;  %s789_s1 = sld [smem:[#allocation7 + $0x104]]  ;;  %s510_s10 = sld [smem:[#allocation10 + $0x2]] }
  0x43   :  { %v84_v14 = vadd.f32 %v80_v6, %v77_v4  ;;  %v85_v15 = vadd.f32 %v81_v7, %v77_v4  ;;  %v86_v16 = vadd.f32 %v82_v8, %v77_v4  ;;  %v87_v17 = vadd.f32 %v83_v9, %v77_v4  ;;  %s630_s11 = smov [#allocation11]  }
  0x44   :  { %v112_v22 = vmul.f32 %v111_v11, %v682_v0  ;;  %v113_v23 = vmul.f32 %v111_v11, %v684_v1  ;;  %v114_v24 = vmul.f32 %v111_v11, %v686_v2  ;;  %v115_v25 = vmul.f32 %v111_v11, %v688_v3  ;;  %s482_s12 = sshll.u32 %s630_s11, 4  ;;  %s483_s12 = int_to_ptr.vmem [resolvable:$true] %s482_s12 }
  0x45   :  { %v98_v26 = vrot.slane %v90_v18, 1  ;;  %v99_v27 = vrot.slane %v91_v19, 1  ;;  %v100_v28 = vrot.slane %v92_v20, 1  ;;  %v101_v29 = vrot.slane %v93_v21, 1  ;;  %s595_s13 = scalar_lea.vmem %s483_s12, 64  ;;  %p600_p10 = scmp.lt.s32.totalorder %s483_s12, %s483_s12 }
  0x46   :  { %v120_v30 = vrot.slane %v112_v22, 2  ;;  %v121_v31 = vrot.slane %v113_v23, 2  ;;  %v122_v32 = vrot.slane %v114_v24, 2  ;;  %v123_v33 = vrot.slane %v115_v25, 2  ;;  %p596_p9 = scmp.ne.s32.totalorder %s483_s12, %s595_s13  ;;  %p601_p11 = scmp.lt.s32.totalorder %s595_s13, %s595_s13 }
  0x47   :  { %v106_v34 = vadd.f32 %v98_v26, %v84_v14  ;;  %v107_v35 = vadd.f32 %v99_v27, %v85_v15  ;;  %v108_v36 = vadd.f32 %v100_v28, %v86_v16  ;;  %v109_v37 = vadd.f32 %v101_v29, %v87_v17 }
  0x48   :  { %v134_v38 = vmul.f32 %v133_v12, %v682_v0  ;;  %v135_v39 = vmul.f32 %v133_v12, %v684_v1  ;;  %v136_v40 = vmul.f32 %v133_v12, %v686_v2  ;;  %v137_v41 = vmul.f32 %v133_v12, %v688_v3  ;;  %p602_p12 = por %p601_p11, %p600_p10 }
  0x49   :  { %v128_v42 = vadd.f32 %v120_v30, %v106_v34  ;;  %v129_v43 = vadd.f32 %v121_v31, %v107_v35  ;;  %v130_v44 = vadd.f32 %v122_v32, %v108_v36  ;;  %v131_v45 = vadd.f32 %v123_v33, %v109_v37 }
  0x4a   :  { %v142_v46 = vrot.slane %v134_v38, 3  ;;  %v143_v47 = vrot.slane %v135_v39, 3  ;;  %v144_v48 = vrot.slane %v136_v40, 3  ;;  %v145_v49 = vrot.slane %v137_v41, 3  ;;  %p603_p13 = pnand %p602_p12, %p596_p9 }
  0x4b   :  { %v156_v50 = vmul.f32 %v155_v13, %v682_v0  ;;  %v157_v51 = vmul.f32 %v155_v13, %v684_v1  ;;  %v158_v52 = vmul.f32 %v155_v13, %v686_v2  ;;  %v159_v53 = vmul.f32 %v155_v13, %v688_v3 }
  0x4c   :  { %v150_v54 = vadd.f32 %v142_v46, %v128_v42  ;;  %v151_v55 = vadd.f32 %v143_v47, %v129_v43  ;;  %v152_v56 = vadd.f32 %v144_v48, %v130_v44  ;;  %v153_v57 = vadd.f32 %v145_v49, %v131_v45 }
  0x4d   :  { %v164_v58 = vrot.slane %v156_v50, 4  ;;  %v165_v59 = vrot.slane %v157_v51, 4  ;;  %v166_v60 = vrot.slane %v158_v52, 4  ;;  %v167_v61 = vrot.slane %v159_v53, 4 }
  0x4e   :  { %v193_v62 = vstv %s702_s22  ;;  %v191_v6 = vstv %s704_s23  ;;  %v203_v14 = vstv %s710_s24  ;;  %v181_v16 = vstv %s180_s25 }
  0x4f   :  { %v172_v63 = vadd.f32 %v164_v58, %v150_v54  ;;  %v173_v4 = vadd.f32 %v165_v59, %v151_v55  ;;  %v174_v5 = vadd.f32 %v166_v60, %v152_v56  ;;  %v194_v7 = vmul.f32 %v193_v62, %v682_v0 }
  0x50   :  { %v195_v8 = vmul.f32 %v193_v62, %v684_v1  ;;  %v196_v9 = vmul.f32 %v193_v62, %v686_v2  ;;  %v197_v10 = vmul.f32 %v193_v62, %v688_v3  ;;  %v728_v11 = vadd.f32 %v167_v61, %v153_v57 }
  0x51   :  { %v176_v12 = vmax.f32 %v172_v63, 0.0  ;;  %v177_v13 = vmax.f32 %v173_v4, 0.0  ;;  %v178_v15 = vmax.f32 %v174_v5, 0.0  ;;  %v198_v17 = vadd.f32 %v194_v7, %v191_v6 }
  0x52   :  { %v199_v18 = vadd.f32 %v195_v8, %v191_v6  ;;  %v200_v19 = vadd.f32 %v196_v9, %v191_v6  ;;  %v201_v20 = vadd.f32 %v197_v10, %v191_v6  ;;  %v204_v21 = vmul.f32 %v203_v14, %v682_v0 }
  0x53   :  { %v205_v22 = vmul.f32 %v203_v14, %v684_v1  ;;  %v206_v23 = vmul.f32 %v203_v14, %v686_v2  ;;  %v207_v24 = vmul.f32 %v203_v14, %v688_v3  ;;  %v738_v25 = vstv %s829_s4  ;;  %s748_s4 = sld [smem:[#allocation7 + $0x100]] }
  0x54   :  { %v179_v26 = vmax.f32 %v728_v11, 0.0  ;;  %v182_v27 = vmul.f32 %v181_v16, %v176_v12  ;;  %v183_v28 = vmul.f32 %v181_v16, %v177_v13  ;;  %v212_v29 = vrot.slane %v204_v21, 1 }
  0x55   :  { %v213_v30 = vrot.slane %v205_v22, 1  ;;  %v214_v31 = vrot.slane %v206_v23, 1  ;;  %v215_v32 = vrot.slane %v207_v24, 1  ;;  %v184_v33 = vmul.f32 %v181_v16, %v178_v15 }
  0x56   :  { %v225_v34 = vstv %s717_s26  ;;  %v247_v35 = vstv %s720_s27  ;;  %v269_v36 = vstv %s722_s2  ;;  %v220_v37 = vadd.f32 %v212_v29, %v198_v17 }
  0x57   :  { %v221_v38 = vadd.f32 %v213_v30, %v199_v18  ;;  %v222_v39 = vadd.f32 %v214_v31, %v200_v19  ;;  %v223_v40 = vadd.f32 %v215_v32, %v201_v20  ;;  %v226_v41 = vmul.f32 %v225_v34, %v682_v0 }
  0x58   :  { %v227_v42 = vmul.f32 %v225_v34, %v684_v1  ;;  %v228_v43 = vmul.f32 %v225_v34, %v686_v2  ;;  %v229_v44 = vmul.f32 %v225_v34, %v688_v3  ;;  %v248_v45 = vmul.f32 %v247_v35, %v682_v0 }
  0x59   :  { %v249_v46 = vmul.f32 %v247_v35, %v684_v1  ;;  %v250_v47 = vmul.f32 %v247_v35, %v686_v2  ;;  %v251_v48 = vmul.f32 %v247_v35, %v688_v3  ;;  %v234_v49 = vrot.slane %v226_v41, 2 }
  0x5a   :  { %v235_v50 = vrot.slane %v227_v42, 2  ;;  %v236_v51 = vrot.slane %v228_v43, 2  ;;  %v237_v52 = vrot.slane %v229_v44, 2  ;;  %v256_v53 = vrot.slane %v248_v45, 3 }
  0x5b   :  { %v257_v54 = vrot.slane %v249_v46, 3  ;;  %v258_v55 = vrot.slane %v250_v47, 3  ;;  %v259_v56 = vrot.slane %v251_v48, 3  ;;  %v242_v57 = vadd.f32 %v234_v49, %v220_v37 }
  0x5c   :  { %v243_v58 = vadd.f32 %v235_v50, %v221_v38  ;;  %v244_v59 = vadd.f32 %v236_v51, %v222_v39  ;;  %v245_v60 = vadd.f32 %v237_v52, %v223_v40  ;;  %v270_v61 = vmul.f32 %v269_v36, %v682_v0 }
  0x5d   :  { %v271_v62 = vmul.f32 %v269_v36, %v684_v1  ;;  %v272_v63 = vmul.f32 %v269_v36, %v686_v2  ;;  %v273_v4 = vmul.f32 %v269_v36, %v688_v3  ;;  %v264_v5 = vadd.f32 %v256_v53, %v242_v57 }
  0x5e   :  { %v265_v6 = vadd.f32 %v257_v54, %v243_v58  ;;  %v266_v7 = vadd.f32 %v258_v55, %v244_v59  ;;  %v267_v8 = vadd.f32 %v259_v56, %v245_v60  ;;  %v278_v9 = vrot.slane %v270_v61, 4 }
  0x5f   :  { %v279_v10 = vrot.slane %v271_v62, 4  ;;  %v280_v11 = vrot.slane %v272_v63, 4  ;;  %v281_v12 = vrot.slane %v273_v4, 4  ;;  %v185_v13 = vmul.f32 %v181_v16, %v179_v26 }
  0x60   :  { %v767_v14 = vadd.f32 %v182_v27, %v738_v25  ;;  %v770_v15 = vadd.f32 %v183_v28, %v738_v25  ;;  %v307_v17 = vstv %s748_s4  ;;  %v286_v18 = vadd.f32 %v278_v9, %v264_v5 }
  0x61   :  { %v287_v19 = vadd.f32 %v279_v10, %v265_v6  ;;  %v305_v20 = vstv %s754_s30  ;;  %v317_v21 = vstv %s756_s6  ;;  %v308_v22 = vmul.f32 %v307_v17, %v682_v0 }
  0x62   :  { %v309_v23 = vmul.f32 %v307_v17, %v684_v1  ;;  %v310_v24 = vmul.f32 %v307_v17, %v686_v2  ;;  %v311_v16 = vmul.f32 %v307_v17, %v688_v3  ;;  %v288_v26 = vadd.f32 %v280_v11, %v266_v7 }
  0x63   :  { %v289_v27 = vadd.f32 %v281_v12, %v267_v8  ;;  %v290_v29 = vmax.f32 %v286_v18, 0.0  ;;  %v291_v28 = vmax.f32 %v287_v19, 0.0  ;;  %v780_v30 = vadd.f32 %v184_v33, %v738_v25 }
  0x64   :  { %v783_v31 = vadd.f32 %v185_v13, %v738_v25  ;;  %v295_v32 = vstv %s758_s7  ;;  %v339_v34 = vstv %s760_s8  ;;  %v312_v35 = vadd.f32 %v308_v22, %v305_v20 }
  0x65   :  { %v313_v36 = vadd.f32 %v309_v23, %v305_v20  ;;  %v314_v37 = vadd.f32 %v310_v24, %v305_v20  ;;  %v315_v38 = vadd.f32 %v311_v16, %v305_v20  ;;  %v318_v39 = vmul.f32 %v317_v21, %v682_v0 }
  0x66   :  { %v319_v40 = vmul.f32 %v317_v21, %v684_v1  ;;  %v320_v33 = vmul.f32 %v317_v21, %v686_v2  ;;  %v321_v41 = vmul.f32 %v317_v21, %v688_v3  ;;  %v292_v25 = vmax.f32 %v288_v26, 0.0 }
  0x67   :  { %v293_v42 = vmax.f32 %v289_v27, 0.0  ;;  %v296_v43 = vmul.f32 %v295_v32, %v290_v29  ;;  %v297_v44 = vmul.f32 %v295_v32, %v291_v28  ;;  %v326_v45 = vrot.slane %v318_v39, 1 }
  0x68   :  { %v327_v46 = vrot.slane %v319_v40, 1  ;;  %v328_v47 = vrot.slane %v320_v33, 1  ;;  %v329_v48 = vrot.slane %v321_v41, 1  ;;  %v340_v49 = vmul.f32 %v339_v34, %v682_v0 }
  0x69   :  { %v341_v50 = vmul.f32 %v339_v34, %v684_v1  ;;  %v342_v51 = vmul.f32 %v339_v34, %v686_v2  ;;  %v343_v52 = vmul.f32 %v339_v34, %v688_v3  ;;  %v334_v53 = vadd.f32 %v326_v45, %v312_v35 }
  0x6a   :  { %v335_v54 = vadd.f32 %v327_v46, %v313_v36  ;;  %v336_v55 = vadd.f32 %v328_v47, %v314_v37  ;;  %v337_v56 = vadd.f32 %v329_v48, %v315_v38  ;;  %v348_v57 = vrot.slane %v340_v49, 2 }
  0x6b   :  { %v349_v58 = vrot.slane %v341_v50, 2  ;;  %v350_v59 = vrot.slane %v342_v51, 2  ;;  %v351_v60 = vrot.slane %v343_v52, 2  ;;  %v298_v61 = vmul.f32 %v295_v32, %v292_v25 }
  0x6c   :  { %v299_v62 = vmul.f32 %v295_v32, %v293_v42  ;;  %v361_v63 = vstv %s787_s9  ;;  %v383_v4 = vstv %s789_s1  ;;  %v356_v5 = vadd.f32 %v348_v57, %v334_v53 }
  0x6d   :  { %v357_v6 = vadd.f32 %v349_v58, %v335_v54  ;;  %v358_v7 = vadd.f32 %v350_v59, %v336_v55  ;;  %v359_v8 = vadd.f32 %v351_v60, %v337_v56  ;;  %v362_v9 = vmul.f32 %v361_v63, %v682_v0 }
  0x6e   :  { %v363_v10 = vmul.f32 %v361_v63, %v684_v1  ;;  %v364_v11 = vmul.f32 %v361_v63, %v686_v2  ;;  %v365_v12 = vmul.f32 %v361_v63, %v688_v3  ;;  %v384_v13 = vmul.f32 %v383_v4, %v682_v0 }
  0x6f   :  { %v385_v17 = vmul.f32 %v383_v4, %v684_v1  ;;  %v386_v18 = vmul.f32 %v383_v4, %v686_v2  ;;  %v387_v19 = vmul.f32 %v383_v4, %v688_v3  ;;  %v370_v20 = vrot.slane %v362_v9, 3 }
  0x70   :  { %v371_v21 = vrot.slane %v363_v10, 3  ;;  %v372_v22 = vrot.slane %v364_v11, 3  ;;  %v373_v23 = vrot.slane %v365_v12, 3  ;;  %v392_v24 = vrot.slane %v384_v13, 4 }
  0x71   :  { %v393_v16 = vrot.slane %v385_v17, 4  ;;  %v394_v26 = vrot.slane %v386_v18, 4  ;;  %v395_v27 = vrot.slane %v387_v19, 4  ;;  %v378_v29 = vadd.f32 %v370_v20, %v356_v5 }
  0x72   :  { %v379_v28 = vadd.f32 %v371_v21, %v357_v6  ;;  %v380_v32 = vadd.f32 %v372_v22, %v358_v7  ;;  %v381_v34 = vadd.f32 %v373_v23, %v359_v8  ;;  %v300_v0 = vadd.f32 %v296_v43, %v767_v14 }
  0x73   :  { %v400_v35 = vadd.f32 %v392_v24, %v378_v29  ;;  %v301_v3 = vadd.f32 %v297_v44, %v770_v15  ;;  %v302_v37 = vadd.f32 %v298_v61, %v780_v30  ;;  %v303_v38 = vadd.f32 %v299_v62, %v783_v31 }
  0x74   :  { %v401_v1 = vadd.f32 %v393_v16, %v379_v28  ;;  %v402_v36 = vadd.f32 %v394_v26, %v380_v32  ;;  %v403_v2 = vadd.f32 %v395_v27, %v381_v34  ;;  %v409_v39 = vstv %s510_s10 }
  0x75   :  { %v404_v40 = vmax.f32 %v400_v35, 0.0  ;;  %v629_v58 = vmov 1966171168   ;;  %v451_v60 = vlaneseq }
  0x76   :  { %v405_v33 = vmax.f32 %v401_v1, 0.0  ;;  %v406_v41 = vmax.f32 %v402_v36, 0.0  ;;  %v407_v25 = vmax.f32 %v403_v2, 0.0  ;;  %v449_v59 = vunpack.c.l.s4 %v629_v58 }
  0x77   :  { %v410_v42 = vmul.f32 %v409_v39, %v404_v40  ;;  %v452_v62 = vshrl.u32 %v451_v60, 7  ;;  %vm473_vm0 = vcmp.lt.s32.totalorder %v451_v60, 512 }
  0x78   :  { %v411_v45 = vmul.f32 %v409_v39, %v405_v33  ;;  %v412_v46 = vmul.f32 %v409_v39, %v406_v41  ;;  %v413_v47 = vmul.f32 %v409_v39, %v407_v25  ;;  %v450_v61 = vunpack.c.0.s8 %v449_v59 }
  0x79   :  { %v414_v14 = vadd.f32 %v410_v42, %v300_v0 }
  0x7a   :  { %v415_v43 = vadd.f32 %v411_v45, %v301_v3  ;;  %v416_v48 = vadd.f32 %v412_v46, %v302_v37  ;;  %v417_v49 = vadd.f32 %v413_v47, %v303_v38  ;;  %v453_v4 = vsub.s32 %v450_v61, %v452_v62 }
  0x7b   :  { %v511_v50 = vmul.f32 -1.442695, %v414_v14 }
  0x7c   :  { %v512_v51 = vmul.f32 -1.442695, %v415_v43  ;;  %v513_v15 = vmul.f32 -1.442695, %v416_v48  ;;  %v514_v44 = vmul.f32 -1.442695, %v417_v49 }
  0x7d   :  { %521 = vpow2.f32 %v511_v50 }
  0x7e   :  { %523 = vpow2.f32 %v512_v51 }
  0x7f   :  { %525 = vpow2.f32 %v513_v15 }
  0x80   :  { %527 = vpow2.f32 %v514_v44 }
  0x87   :  { %v522_v30 = vpop.eup %521 }
  0x88   :  { %v524_v31 = vpop.eup %523  ;;  %v430_v52 = vadd.f32 1.0, %v522_v30 }
  0x89   :  { %v526_v53 = vpop.eup %525  ;;  %v431_v54 = vadd.f32 1.0, %v524_v31 }
  0x8a   :  { %v528_v55 = vpop.eup %527  ;;  %v432_v56 = vadd.f32 1.0, %v526_v53  ;;  %529 = vrcp.f32 %v430_v52 }
  0x8b   :  { %v433_v57 = vadd.f32 1.0, %v528_v55  ;;  %531 = vrcp.f32 %v431_v54 }
  0x8c   :  { %533 = vrcp.f32 %v432_v56 }
  0x8d   :  { %535 = vrcp.f32 %v433_v57 }
  0x94   :  { %v530_v63 = vpop.eup %529 }
  0x95   :  { %v532_v5 = vpop.eup %531 }
  0x96   :  { %v534_v6 = vpop.eup %533  ;;  %v446_v7 = vcombine.low %v530_v63, %v532_v5 }
  0x97   :  { %v536_v8 = vpop.eup %535 }
  0x98   :  { %v447_v9 = vcombine.low %v534_v6, %v536_v8  ;;  %v454_v10 = vrot.slane %v446_v7, %v453_v4 }
  0x9a   :  { %v461_v11 = vrot.slane %v447_v9, %v453_v4 }
  0x9c   :  { %v462_v12 = vcombine.low %v454_v10, %v461_v11 }
  0x9e   :  { %v469_v13 = vrot.slane %v462_v12, %v453_v4 }
  0xa0   :  { %475 = vst.msk [vmem:[#allocation11] sm:$0xf] %vm473_vm0, %v469_v13 }
  0xa1   :  { %606 = shalt.err (!%p603_p13)
}
  0xa2   :  { %s607_s16 = scalar_lea.hbm %s830_s5, 64 }
  0xa3   :  { %p608_p0 = scmp.ne.s32.totalorder %s830_s5, %s607_s16  ;;  %p611_p1 = scmp.lt.u32.totalorder %s607_s16, %s830_s5 }
  0xa5   :  { %p613_p2 = pnand %p611_p1, %p608_p0 }
  0xa7   :  { %616 = shalt.err (!%p613_p2)
}
  0xa8   :  { %485 = dma.vmem_to_hbm [thread:$0]  %s483_s12, 64, %s830_s5, [#allocation5]  }
  0xa9   :  { %623 = dma.done.wait [#allocation5], 64  }
  0xaa   :  { %624 = vsyncadd [#allocation5], 4294967232 }
  0xab   :  { %489 = vsyncpa [#allocation4], 1 }
  0xac   :  { %490 = vsyncpa [#allocation5], 1 }
  0xad   :  { %491 = vsyncpa [#allocation6], 1 }
  0xae   :  { %492 = vsyncpa [#allocation9], 1 }

</bundles_post_ra>
